<compile_context>
chip_gen: v5e
topology: v5e:2x2
jax: 0.10.0
libtpu: 0.0.40
codegen_flags: <defaults>
</compile_context>

<pallas_src>
import functools

import jax
import jax.numpy as jnp
from jax.experimental import pallas as pl
from jax.experimental.pallas import tpu as pltpu

LANE = 128
SUBLANE = 8


# ----------------------------------------------------------------------------
# Unbiased std of the first n_valid elements of v (extra lanes must be zero).
# One shared lane (XLU) reduction for sum and sum-of-squares.
# ----------------------------------------------------------------------------
def _std_unbiased(v, n_valid):
    rows = v.shape[0]
    vv = jnp.concatenate([v, v * v], axis=0)               # (2R, C) aligned concat
    lane_sums = jnp.sum(vv, axis=1, keepdims=True)         # (2R, 1): ONE lane reduce
    s = jnp.sum(lane_sums[0:rows], axis=0, keepdims=True)          # (1,1) sum(v)
    ss = jnp.sum(lane_sums[rows:2 * rows], axis=0, keepdims=True)  # (1,1) sum(v*v)
    inv_n = 1.0 / n_valid
    inv_nm1 = 1.0 / (n_valid - 1)
    var = (ss - s * s * inv_n) * inv_nm1
    return jnp.sqrt(jnp.maximum(var, 0.0))                 # clamp: no NaN from cancellation


# ----------------------------------------------------------------------------
# Fused kernel body (one grid step == one microbatch):
#   Linear -> ReLU -> Linear, plus std(input) and std(valid output).
# ----------------------------------------------------------------------------
def _fused_kernel(x_ref, w1_ref, b1_ref, w2_ref, b2_ref, y_ref, stats_ref,
                  *, n_in_valid, n_out_valid):
    x = x_ref[0].astype(jnp.float32)                        # (B, IN)

    std_in = _std_unbiased(x, n_in_valid)                   # _forward_pre_hook value

    h = jnp.dot(x, w1_ref[...], preferred_element_type=jnp.float32) + b1_ref[...]
    h = jnp.maximum(h, 0.0)                                  # ReLU on the VPU
    y = jnp.dot(h, w2_ref[...], preferred_element_type=jnp.float32) + b2_ref[...]
    y_ref[0] = y.astype(y_ref.dtype)                         # full-tile unmasked store

    # Padded lanes of y are exactly zero (w2/b2 zero-padded) -> they contribute
    # nothing to the sums; divide by the true valid element count.
    std_out = _std_unbiased(y, n_out_valid)                  # _forward_hook value

    lane = jax.lax.broadcasted_iota(jnp.int32, (SUBLANE, LANE), 1)
    stats_ref[0] = jnp.where(lane < LANE // 2, std_in, std_out)   # lane-dense store


# ----------------------------------------------------------------------------
# One launch for ALL microbatches.  x: (M, B, IN).
# Returns (y, std_in, std_out): y (M, B, out_dim), stds (M,) device arrays.
# ----------------------------------------------------------------------------
@functools.partial(jax.jit, static_argnums=(5,))
def fused_forward(x, w1p, b1p, w2p, b2p, out_dim):
    m, batch, in_dim = x.shape
    hp = w1p.shape[1]
    op = w2p.shape[1]
    kernel = functools.partial(_fused_kernel,
                               n_in_valid=batch * in_dim,
                               n_out_valid=batch * out_dim)
    y_pad, stats = pl.pallas_call(
        kernel,
        grid=(m,),
        in_specs=[
            pl.BlockSpec((1, batch, in_dim), lambda i: (i, 0, 0)),   # per-microbatch x
            pl.BlockSpec((in_dim, hp), lambda i: (0, 0)),            # weights: VMEM-resident
            pl.BlockSpec((1, hp), lambda i: (0, 0)),
            pl.BlockSpec((hp, op), lambda i: (0, 0)),
            pl.BlockSpec((1, op), lambda i: (0, 0)),
        ],
        out_specs=(
            pl.BlockSpec((1, batch, op), lambda i: (i, 0, 0)),       # padded output slab
            pl.BlockSpec((1, SUBLANE, LANE), lambda i: (i, 0, 0)),   # lane-dense stats tile
        ),
        out_shape=(
            jax.ShapeDtypeStruct((m, batch, op), jnp.float32),
            jax.ShapeDtypeStruct((m, SUBLANE, LANE), jnp.float32),
        ),
        compiler_params=pltpu.CompilerParams(
            dimension_semantics=("parallel",)),   # v7x: shard microbatches over 2 TCs
    )(x, w1p, b1p, w2p, b2p)
    # One tiny slice fusion per launch (covers every microbatch at once).
    return y_pad[..., :out_dim], stats[:, 0, 0], stats[:, 0, LANE // 2]


# ----------------------------------------------------------------------------
# The wrapped module: Linear(32->64) -> ReLU -> Linear(64->32).
# Weights are lane-padded to 128 once at init (zeros); true shapes kept too.
# ----------------------------------------------------------------------------
def _round_up(n, mult):
    return -(-n // mult) * mult


def _pad_last(a, target):
    pad = target - a.shape[-1]
    if pad <= 0:
        return a
    return jnp.pad(a, [(0, 0)] * (a.ndim - 1) + [(0, pad)])


class InnerMLP:
    def __init__(self, key, in_dim=32, hidden=64, out_dim=32):
        k1, k2, k3, k4 = jax.random.split(key, 4)
        self.in_dim, self.hidden, self.out_dim = in_dim, hidden, out_dim
        self.w1 = jax.random.normal(k1, (in_dim, hidden), jnp.float32) * 0.05
        self.b1 = jax.random.normal(k2, (1, hidden), jnp.float32) * 0.01
        self.w2 = jax.random.normal(k3, (hidden, out_dim), jnp.float32) * 0.05
        self.b2 = jax.random.normal(k4, (1, out_dim), jnp.float32) * 0.01
        hp = _round_up(hidden, LANE)
        op = _round_up(out_dim, LANE)
        self.w1p = _pad_last(self.w1, hp)                                 # (in, 128)
        self.b1p = _pad_last(self.b1, hp)                                 # (1, 128)
        self.w2p = jnp.zeros((hp, op), jnp.float32).at[:hidden, :out_dim].set(self.w2)
        self.b2p = _pad_last(self.b2, op)                                 # (1, 128)

    def forward_with_stats(self, x):
        """x: (M, B, in_dim) -> (y, std_in, std_out); ONE kernel launch total."""
        return fused_forward(x, self.w1p, self.b1p, self.w2p, self.b2p, self.out_dim)

    def forward(self, x):
        y, _, _ = self.forward_with_stats(x)
        return y


# ----------------------------------------------------------------------------
# ModelWrapper: pass-through forward + pipeline-logging hook semantics.
# Accepts a single microbatch (B, in_dim) or the stacked set (M, B, in_dim);
# the stacked form runs every microbatch in one fused launch.
# ----------------------------------------------------------------------------
class ModelWrapper:
    def __init__(self, model, microbatches=4):
        self.model = model
        self.type = type(model)
        self.microbatches_forward = [None] * microbatches
        self.microbatches_backward = [None] * microbatches
        self.log_pp = True
        # TODO(synk): full_backward hooks and DDP/PipelineStage distributed
        # plumbing need autograd VJP / collective infrastructure; only the
        # forward-side (std logging) semantics are reproduced here.

    def forward(self, x):
        squeeze = x.ndim == 2
        x3 = x[None] if squeeze else x
        y, std_in, std_out = self.model.forward_with_stats(x3)
        if self.log_pp:
            for i in range(x3.shape[0]):
                try:
                    mb = self.microbatches_forward.index(None)
                except ValueError:
                    mb = -1
                # _forward_pre_hook then _forward_hook (same slot, overwritten),
                # matching the PyTorch bookkeeping; values stay on device.
                self.microbatches_forward[mb] = std_in[i]
                self.microbatches_forward[mb] = std_out[i]
        return y[0] if squeeze else y

    def get_log_pp(self):
        return self.log_pp

    def set_log_pp(self, log_pp):
        self.log_pp = log_pp

    def initialize(self):
        n = len(self.microbatches_forward)
        self.microbatches_forward = [None] * n
        self.microbatches_backward = [None] * n


if __name__ == "__main__":
    key = jax.random.PRNGKey(0)
    kx, kp = jax.random.split(key)

    batch, in_dim, hidden, out_dim = 8, 32, 64, 32
    microbatches = 4

    inner = InnerMLP(kp, in_dim=in_dim, hidden=hidden, out_dim=out_dim)
    wrapper = ModelWrapper(inner, microbatches=microbatches)

    xs = jax.random.normal(kx, (microbatches, batch, in_dim), jnp.float32)

    # Direct call (also warms the jit cache): one launch for all microbatches.
    y0, s_in0, s_out0 = inner.forward_with_stats(xs)
    jax.block_until_ready(y0)

    # Pipeline-style forward: the whole microbatch set in ONE fused launch,
    # no host syncs in the hot path (logged stds stay on device).
    ys = wrapper.forward(xs)
    ys = jax.block_until_ready(ys)

    # Reference checks against plain JAX (unpadded weights).
    for mb in range(microbatches):
        x = xs[mb]
        ref = jnp.maximum(x @ inner.w1 + inner.b1, 0.0) @ inner.w2 + inner.b2
        assert ys[mb].shape == (batch, out_dim)
        assert jnp.allclose(ys[mb], ref, atol=1e-4, rtol=1e-4)
        ref_std_out = float(jnp.std(ref, ddof=1))
        got_std = float(wrapper.microbatches_forward[mb])   # host pull AFTER the loop
        assert abs(got_std - ref_std_out) < 1e-4
        ref_std_in = float(jnp.std(x, ddof=1))
        assert abs(float(s_in0[mb]) - ref_std_in) < 1e-4
        assert abs(float(s_out0[mb]) - ref_std_out) < 1e-4

    # Single-microbatch (2-D input) path still supported.
    y_single = jax.block_until_ready(wrapper.forward(xs[0]))
    assert y_single.shape == (batch, out_dim)
    assert jnp.allclose(y_single, ys[0], atol=1e-5, rtol=1e-5)

    print("KERNEL_OK")
</pallas_src>

<mosaic_0001>
module attributes {stable_mosaic.version = 11 : i64} {
  func.func @_fused_kernel(%arg0: i32, %arg1: memref<1x8x32xf32, #tpu.memory_space<vmem>>, %arg2: memref<32x128xf32, #tpu.memory_space<vmem>>, %arg3: memref<1x128xf32, #tpu.memory_space<vmem>>, %arg4: memref<128x128xf32, #tpu.memory_space<vmem>>, %arg5: memref<1x128xf32, #tpu.memory_space<vmem>>, %arg6: memref<1x8x128xf32, #tpu.memory_space<vmem>>, %arg7: memref<1x8x128xf32, #tpu.memory_space<vmem>>) attributes {dimension_semantics = [#tpu.dimension_semantics<parallel>], iteration_bounds = array<i64: 4>, scalar_prefetch = 0 : i64, scratch_operands = 0 : i64, tpu.core_type = #tpu.core_type<tc>, window_params = [{transform_indices = @transform_0, window_bounds = array<i64: 1, 8, 32>}, {pipeline_mode = #tpu.pipeline_mode<synchronous>, transform_indices = @transform_1, window_bounds = array<i64: 32, 128>}, {pipeline_mode = #tpu.pipeline_mode<synchronous>, transform_indices = @transform_2, window_bounds = array<i64: 1, 128>}, {pipeline_mode = #tpu.pipeline_mode<synchronous>, transform_indices = @transform_3, window_bounds = array<i64: 128, 128>}, {pipeline_mode = #tpu.pipeline_mode<synchronous>, transform_indices = @transform_4, window_bounds = array<i64: 1, 128>}, {transform_indices = @transform_5, window_bounds = array<i64: 1, 8, 128>}, {transform_indices = @transform_6, window_bounds = array<i64: 1, 8, 128>}]} {
    %c0 = arith.constant 0 : index
    %c0_0 = arith.constant 0 : index
    %c0_1 = arith.constant 0 : index
    %0 = vector.load %arg1[%c0, %c0_0, %c0_1] : memref<1x8x32xf32, #tpu.memory_space<vmem>>, vector<1x8x32xf32>
    %1 = vector.shape_cast %0 : vector<1x8x32xf32> to vector<8x32xf32>
    %2 = arith.mulf %1, %1 : vector<8x32xf32>
    %3 = tpu.concatenate %1, %2 in 0 : vector<8x32xf32>, vector<8x32xf32> -> vector<16x32xf32>
    %cst = arith.constant dense<0.000000e+00> : vector<16xf32>
    %4 = vector.multi_reduction <add>, %3, %cst [1] : vector<16x32xf32> to vector<16xf32>
    %5 = vector.shape_cast %4 : vector<16xf32> to vector<16x1xf32>
    %6 = vector.extract_strided_slice %5 {offsets = [0, 0], sizes = [8, 1], strides = [1, 1]} : vector<16x1xf32> to vector<8x1xf32>
    %cst_2 = arith.constant dense<0.000000e+00> : vector<1xf32>
    %7 = vector.multi_reduction <add>, %6, %cst_2 [0] : vector<8x1xf32> to vector<1xf32>
    %8 = vector.shape_cast %7 : vector<1xf32> to vector<1x1xf32>
    %9 = vector.extract_strided_slice %5 {offsets = [8, 0], sizes = [8, 1], strides = [1, 1]} : vector<16x1xf32> to vector<8x1xf32>
    %cst_3 = arith.constant dense<0.000000e+00> : vector<1xf32>
    %10 = vector.multi_reduction <add>, %9, %cst_3 [0] : vector<8x1xf32> to vector<1xf32>
    %11 = vector.shape_cast %10 : vector<1xf32> to vector<1x1xf32>
    %12 = arith.mulf %8, %8 : vector<1x1xf32>
    %cst_4 = arith.constant 3.906250e-03 : f32
    %13 = vector.broadcast %cst_4 : f32 to vector<1x1xf32>
    %14 = arith.mulf %12, %13 : vector<1x1xf32>
    %15 = arith.subf %11, %14 : vector<1x1xf32>
    %cst_5 = arith.constant 0.00392156886 : f32
    %16 = vector.broadcast %cst_5 : f32 to vector<1x1xf32>
    %17 = arith.mulf %15, %16 : vector<1x1xf32>
    %cst_6 = arith.constant 0.000000e+00 : f32
    %18 = vector.broadcast %cst_6 : f32 to vector<1x1xf32>
    %19 = arith.maximumf %17, %18 : vector<1x1xf32>
    %20 = math.sqrt %19 : vector<1x1xf32>
    %c0_7 = arith.constant 0 : index
    %c0_8 = arith.constant 0 : index
    %21 = vector.load %arg2[%c0_7, %c0_8] : memref<32x128xf32, #tpu.memory_space<vmem>>, vector<32x128xf32>
    %cst_9 = arith.constant dense<0.000000e+00> : vector<8x128xf32>
    %22 = tpu.matmul %1, %21, %cst_9 {dimension_numbers = #tpu.dot_dimension_numbers<[1], [0], [0], [1], [0, 0, 1, 1], [], []>} : vector<8x32xf32>, vector<32x128xf32>, vector<8x128xf32> -> vector<8x128xf32>
    %c0_10 = arith.constant 0 : index
    %c0_11 = arith.constant 0 : index
    %23 = vector.load %arg3[%c0_10, %c0_11] : memref<1x128xf32, #tpu.memory_space<vmem>>, vector<1x128xf32>
    %24 = vector.broadcast %23 : vector<1x128xf32> to vector<8x128xf32>
    %25 = arith.addf %22, %24 : vector<8x128xf32>
    %cst_12 = arith.constant 0.000000e+00 : f32
    %26 = vector.broadcast %cst_12 : f32 to vector<8x128xf32>
    %27 = arith.maximumf %25, %26 : vector<8x128xf32>
    %c0_13 = arith.constant 0 : index
    %c0_14 = arith.constant 0 : index
    %28 = vector.load %arg4[%c0_13, %c0_14] : memref<128x128xf32, #tpu.memory_space<vmem>>, vector<128x128xf32>
    %cst_15 = arith.constant dense<0.000000e+00> : vector<8x128xf32>
    %29 = tpu.matmul %27, %28, %cst_15 {dimension_numbers = #tpu.dot_dimension_numbers<[1], [0], [0], [1], [0, 0, 1, 1], [], []>} : vector<8x128xf32>, vector<128x128xf32>, vector<8x128xf32> -> vector<8x128xf32>
    %c0_16 = arith.constant 0 : index
    %c0_17 = arith.constant 0 : index
    %30 = vector.load %arg5[%c0_16, %c0_17] : memref<1x128xf32, #tpu.memory_space<vmem>>, vector<1x128xf32>
    %31 = vector.broadcast %30 : vector<1x128xf32> to vector<8x128xf32>
    %32 = arith.addf %29, %31 : vector<8x128xf32>
    %c0_18 = arith.constant 0 : index
    %c0_19 = arith.constant 0 : index
    %c0_20 = arith.constant 0 : index
    %33 = vector.load %arg6[%c0_18, %c0_19, %c0_20] : memref<1x8x128xf32, #tpu.memory_space<vmem>>, vector<1x8x128xf32>
    %34 = vector.shape_cast %33 : vector<1x8x128xf32> to vector<8x128xf32>
    %35 = vector.shape_cast %32 : vector<8x128xf32> to vector<1x8x128xf32>
    tpu.vector_store %arg6[%c0_18, %c0_19, %c0_20], %35 {strides = array<i32>} : memref<1x8x128xf32, #tpu.memory_space<vmem>>, vector<1x8x128xf32>,
    %36 = arith.mulf %32, %32 : vector<8x128xf32>
    %37 = tpu.concatenate %32, %36 in 0 : vector<8x128xf32>, vector<8x128xf32> -> vector<16x128xf32>
    %cst_21 = arith.constant dense<0.000000e+00> : vector<16xf32>
    %38 = vector.multi_reduction <add>, %37, %cst_21 [1] : vector<16x128xf32> to vector<16xf32>
    %39 = vector.shape_cast %38 : vector<16xf32> to vector<16x1xf32>
    %40 = vector.extract_strided_slice %39 {offsets = [0, 0], sizes = [8, 1], strides = [1, 1]} : vector<16x1xf32> to vector<8x1xf32>
    %cst_22 = arith.constant dense<0.000000e+00> : vector<1xf32>
    %41 = vector.multi_reduction <add>, %40, %cst_22 [0] : vector<8x1xf32> to vector<1xf32>
    %42 = vector.shape_cast %41 : vector<1xf32> to vector<1x1xf32>
    %43 = vector.extract_strided_slice %39 {offsets = [8, 0], sizes = [8, 1], strides = [1, 1]} : vector<16x1xf32> to vector<8x1xf32>
    %cst_23 = arith.constant dense<0.000000e+00> : vector<1xf32>
    %44 = vector.multi_reduction <add>, %43, %cst_23 [0] : vector<8x1xf32> to vector<1xf32>
    %45 = vector.shape_cast %44 : vector<1xf32> to vector<1x1xf32>
    %46 = arith.mulf %42, %42 : vector<1x1xf32>
    %cst_24 = arith.constant 3.906250e-03 : f32
    %47 = vector.broadcast %cst_24 : f32 to vector<1x1xf32>
    %48 = arith.mulf %46, %47 : vector<1x1xf32>
    %49 = arith.subf %45, %48 : vector<1x1xf32>
    %cst_25 = arith.constant 0.00392156886 : f32
    %50 = vector.broadcast %cst_25 : f32 to vector<1x1xf32>
    %51 = arith.mulf %49, %50 : vector<1x1xf32>
    %cst_26 = arith.constant 0.000000e+00 : f32
    %52 = vector.broadcast %cst_26 : f32 to vector<1x1xf32>
    %53 = arith.maximumf %51, %52 : vector<1x1xf32>
    %54 = math.sqrt %53 : vector<1x1xf32>
    %55 = tpu.iota {dimensions = array<i32: 1>} : vector<8x128xi32>
    %c64_i32 = arith.constant 64 : i32
    %56 = vector.broadcast %c64_i32 : i32 to vector<8x128xi32>
    %57 = arith.cmpi slt, %55, %56 : vector<8x128xi32>
    %58 = vector.shape_cast %20 : vector<1x1xf32> to vector<1x1xf32>
    %59 = vector.broadcast %58 : vector<1x1xf32> to vector<8x128xf32>
    %60 = vector.shape_cast %54 : vector<1x1xf32> to vector<1x1xf32>
    %61 = vector.broadcast %60 : vector<1x1xf32> to vector<8x128xf32>
    %62 = arith.select %57, %59, %61 : vector<8x128xi1>, vector<8x128xf32>
    %c0_27 = arith.constant 0 : index
    %c0_28 = arith.constant 0 : index
    %c0_29 = arith.constant 0 : index
    %63 = vector.load %arg7[%c0_27, %c0_28, %c0_29] : memref<1x8x128xf32, #tpu.memory_space<vmem>>, vector<1x8x128xf32>
    %64 = vector.shape_cast %63 : vector<1x8x128xf32> to vector<8x128xf32>
    %65 = vector.shape_cast %62 : vector<8x128xf32> to vector<1x8x128xf32>
    tpu.vector_store %arg7[%c0_27, %c0_28, %c0_29], %65 {strides = array<i32>} : memref<1x8x128xf32, #tpu.memory_space<vmem>>, vector<1x8x128xf32>,
    return
  }
  func.func @transform_0(%arg0: i32) -> (i32, i32, i32) {
    %c0_i32 = arith.constant 0 : i32
    %c0_i32_0 = arith.constant 0 : i32
    %c0_i32_1 = arith.constant 0 : i32
    return %arg0, %c0_i32, %c0_i32_0 : i32, i32, i32
  }
  func.func @transform_1(%arg0: i32) -> (i32, i32) {
    %c0_i32 = arith.constant 0 : i32
    %c0_i32_0 = arith.constant 0 : i32
    %c0_i32_1 = arith.constant 0 : i32
    return %c0_i32, %c0_i32_0 : i32, i32
  }
  func.func @transform_2(%arg0: i32) -> (i32, i32) {
    %c0_i32 = arith.constant 0 : i32
    %c0_i32_0 = arith.constant 0 : i32
    %c0_i32_1 = arith.constant 0 : i32
    return %c0_i32, %c0_i32_0 : i32, i32
  }
  func.func @transform_3(%arg0: i32) -> (i32, i32) {
    %c0_i32 = arith.constant 0 : i32
    %c0_i32_0 = arith.constant 0 : i32
    %c0_i32_1 = arith.constant 0 : i32
    return %c0_i32, %c0_i32_0 : i32, i32
  }
  func.func @transform_4(%arg0: i32) -> (i32, i32) {
    %c0_i32 = arith.constant 0 : i32
    %c0_i32_0 = arith.constant 0 : i32
    %c0_i32_1 = arith.constant 0 : i32
    return %c0_i32, %c0_i32_0 : i32, i32
  }
  func.func @transform_5(%arg0: i32) -> (i32, i32, i32) {
    %c0_i32 = arith.constant 0 : i32
    %c0_i32_0 = arith.constant 0 : i32
    %c0_i32_1 = arith.constant 0 : i32
    return %arg0, %c0_i32, %c0_i32_0 : i32, i32, i32
  }
  func.func @transform_6(%arg0: i32) -> (i32, i32, i32) {
    %c0_i32 = arith.constant 0 : i32
    %c0_i32_0 = arith.constant 0 : i32
    %c0_i32_1 = arith.constant 0 : i32
    return %arg0, %c0_i32, %c0_i32_0 : i32, i32, i32
  }
}

</mosaic_0001>

<bundles_post_ra>
// kernel: fused_forward.1
= control target key start
LH: loop header
LB: loop body
LE: loop exit
PB: predicated region body
PF: predicated region fallthrough
CT: control target
= control target key end

     0   :  { %s1054_s0 = inlined_call_operand.hbm [shape: f32[4,8,32], index: 0, kind: input, shape index: {}]   ;;  %s1055_s1 = inlined_call_operand.hbm [shape: f32[32,128], index: 1, kind: input, shape index: {}]   ;;  %s1056_s2 = inlined_call_operand.vmem [shape: f32[1,128], index: 2, kind: input, shape index: {}]   ;;  %s1057_s3 = inlined_call_operand.hbm [shape: f32[128,128], index: 3, kind: input, shape index: {}]   ;;  %s1058_s4 = inlined_call_operand.vmem [shape: f32[1,128], index: 4, kind: input, shape index: {}]   ;;  %s1059_s5 = inlined_call_operand.hbm [shape: f32[4,8,128], index: 5, kind: output, shape index: {0}]   ;;  %s1060_s6 = inlined_call_operand.vmem [shape: f32[4,8,128], index: 6, kind: output, shape index: {1}]  }
   0x1   :  { %1061 = sst [smem:[#allocation12_spill]] %s1055_s1 }
   0x2   :  { %12 = vsyncpa [#allocation3], 0 }
   0x3   :  { %14 = vsyncpa [#allocation3 + $0x1], 0 }
   0x4   :  { %15 = vsyncpa [#allocation6], 0 }
   0x5   :  { %16 = vsyncpa [#allocation4], 0 }
   0x6   :  { %18 = vsyncpa [#allocation4 + $0x1], 0  ;;  %s893_s21 = smov 0   ;;  %s895_s22 = smov 0  }
   0x7   :  { %s897_s23 = smov 0   ;;  %s899_s24 = smov 0  }
   0x8 LB: > { %s1062_s1 = sld [smem:[#allocation12_spill]]  ;;  %s917_s28 = sadd.s32 4294967295, %s852_s24   ;;  %s852_s24 = sphi %s899_s24, %s1072_s24   ;;  %s848_s23 = sphi %s897_s23, %s1071_s23   ;;  %s844_s22 = sphi %s895_s22, %s1070_s22   ;;  %s840_s21 = sphi %s893_s21, %s1069_s21  }
   0x9   : > { %p600_p0 = scmp.ge.s32.totalorder %s852_s24, 1  ;;  %p45_p1 = scmp.eq.s32.totalorder %s917_s28, 0 }
   0xa   : > { %p191_p2 = scmp.lt.s32.totalorder %s852_s24, 5  ;;  %s854_s30 = smov [#allocation5]  }
   0xb   : > { %s204_s7 = sshll.u32 %s854_s30, 4  ;;  %s219_s10 = sshll.u32 %s1057_s3, 4  ;;  %s205_s7 = int_to_ptr.vmem [resolvable:$true] %s204_s7  ;;  %s220_s10 = int_to_ptr.hbm [resolvable:$true] %s219_s10 }
   0xc   : > { %p922_p3 = pnand %p600_p0, %p191_p2  ;;  %s855_s11 = smov [#allocation7]  }
   0xd   : > { %s221_s12 = sshll.u32 %s855_s11, 4  ;;  %s856_s13 = smov 128   ;;  %s222_s12 = int_to_ptr.vmem [resolvable:$true] %s221_s12 }
   0xe   : > { %s202_s27 = sshll.u32 %s1062_s1, 4  ;;  %p629_p4 = pneg %p922_p3  ;;  %s203_s27 = int_to_ptr.hbm [resolvable:$true] %s202_s27 }
   0xf   : > { %s857_s14 = smov 8   ;;  %s599_s15 = sadd.s32 4294967294, %s852_s24  }
  0x10   : > { %p630_p5 = pnand %p629_p4, %p45_p1  ;;  %s935_s16 = sadd.s32 1, %s852_s24  }
  0x11   : > { %s28_s17 = ssub.s32 %s852_s24, %s935_s16  ;;  %s31_s18 = sadd.s32 1, %s848_s23 }
  0x12   : > { %632 = dma.hbm_to_vmem [thread:$0]  (!%p630_p5), %s203_s27, 512, %s205_s7, [#allocation6], %s856_s13, %s856_s13, %s857_s14  }
  0x13   : > { %635 = dma.hbm_to_vmem [thread:$0]  (!%p630_p5), %s220_s10, 2048, %s222_s12, [#allocation6], %s856_s13, %s856_s13, %s857_s14  }
  0x14   : > { %p29_p6 = scmp.eq.s32.totalorder %s28_s17, 0  ;;  %p38_p7 = scmp.ne.s32.totalorder %s848_s23, %s844_s22 }
  0x15   : > { %p39_p8 = scmp.eq.s32.totalorder %s852_s24, 0  ;;  %p44_p9 = scmp.ne.s32.totalorder %s844_s22, %s840_s21 }
  0x16   : > { %s946_s19 = scalar_select %p29_p6, %s848_s23, %s31_s18  }
  0x17   : > { %p948_p10 = por %p39_p8, %p38_p7  ;;  %p954_p11 = por %p45_p1, %p44_p9 }
  0x18   : > { %p152_p12 = scmp.eq.s32.totalorder %s917_s28, 3  ;;  %p158_p13 = scmp.eq.s32.totalorder %s599_s15, 3 }
  0x19   : > { %p646_p0 = scmp.lt.s32.totalorder %s852_s24, 4  ;;  %s238_s26 = sand.u32 1, %s848_s23  }
  0x1a   : > { %p961_p2 = por %p152_p12, %p38_p7  ;;  %p965_p4 = por %p158_p13, %p44_p9 }
  0x1b   : > { %s604_s7 = sshll.u32 %s238_s26, 3  ;;  %s605_s8 = sshll.u32 %s852_s24, 3 }
  0x1c   : > { %s246_s11 = scalar_lea.hbm %s1054_s0, %s605_s8  ;;  %s242_s12 = scalar_lea.vmem [#allocation2], %s604_s7 }
  0x1d   : > { %s250_s13 = sshll.u32 %s242_s12, 4  ;;  %s248_s14 = sshll.u32 %s246_s11, 4  ;;  %s251_s13 = int_to_ptr.vmem [resolvable:$true] %s250_s13  ;;  %s249_s14 = int_to_ptr.hbm [resolvable:$true] %s248_s14 }
  0x1e   : > { %p975_p5 = pnand %p646_p0, %p948_p10  ;;  %s239_s17 = scalar_lea.sflag [#allocation3], %s238_s26 }
  0x1f   : > { %s752_s18 = sshra.s32 %s249_s14, 4  ;;  %s759_s9 = scalar_lea.hbm %s1054_s0, 32  ;;  %s753_s18 = int_to_ptr.hbm [resolvable:$true] %s752_s18 }
  0x20   : > { %s754_s1 = scalar_lea.hbm %s753_s18, 8  ;;  %p756_p7 = pneg %p975_p5 }
  0x21   : > { %p755_p6 = scmp.ne.s32.totalorder %s753_s18, %s754_s1  ;;  %p760_p10 = scmp.lt.s32.totalorder %s753_s18, %s1054_s0 }
  0x22   : > { %p761_p12 = scmp.lt.s32.totalorder %s759_s9, %s754_s1 }
  0x23   : > { %p757_p8 = pnand %p756_p7, %p755_p6 }
  0x24   : > { %p762_p13 = por %p761_p12, %p760_p10 }
  0x25   : > { %p758_p9 = pneg %p757_p8 }
  0x27   : > { %p763_p0 = pnand %p762_p13, %p758_p9 }
  0x29   : > { %766 = shalt.err (!%p763_p0)
}
  0x2a   : > { %639 = dma.hbm_to_vmem [thread:$0]  (!%p975_p5), %s249_s14, 128, %s251_s13, %s239_s17  }
  0x2b   : > { %259 = sbr.rel (%p922_p3) target bundleno = 478 (0x1de), region = 40  ;;  %s992_s26 = sand.u32 (!%p922_p3), 1, %s844_s22  }
  0x2c   : > { %s607_s11 = sshll.u32 (!%p922_p3), %s992_s26, 3  ;;  %s262_s12 = scalar_lea.sflag (!%p922_p3), [#allocation3], %s992_s26 }
  0x2d   : > { %s265_s1 = scalar_lea.vmem (!%p922_p3), [#allocation2], %s607_s11 }
  0x30   : > { %827 = dma.done.wait (%p954_p11), %s262_s12, 128  }
  0x31   : > { %829 = vsyncadd (%p954_p11), %s262_s12, 4294967168 }
  0x32   : > { %831 = dma.done.wait (%p45_p1), [#allocation6], 2560  }
  0x33   : > { %833 = vsyncadd (%p45_p1), [#allocation6], 4294964736  ;;  %v354_v0 = vld [vmem:[#allocation5 + $0x18] sm:$0xff]  ;;  %v353_v1 = vld [vmem:[#allocation5 + $0x10] sm:$0xff]  ;;  %vm315_vm0 = vcmask 261120   ;;  %s302_s15 = scalar_lea.vmem [#allocation8], %s607_s11 }
  0x34   : > { %374 = vmatpush.msra.mxu0 %v354_v0  ;;  %v398_v2 = vld [vmem:[#allocation7 + $0x78] sm:$0xff]  ;;  %v352_v3 = vld [vmem:[#allocation5 + $0x8] sm:$0xff]  ;;  %v397_v4 = vld [vmem:[#allocation7 + $0x70] sm:$0xff]  ;;  %s614_s17 = sshll.u32 %s917_s28, 3  ;;  %s480_s9 = sshll.u32 %s302_s15, 4  ;;  %s481_s9 = int_to_ptr.vmem [resolvable:$true] %s480_s9 }
  0x35   : > { %403 = vmatpush.msra.mxu1 %v398_v2  ;;  %v396_v5 = vld [vmem:[#allocation7 + $0x68] sm:$0xff]  ;;  %v351_v6 = vld [vmem:[#allocation5] sm:$0xff]  ;;  %v313_v7 = vld [vmem:[%s265_s1] sm:$0xff]  ;;  %s478_s8 = scalar_lea.hbm %s1059_s5, %s614_s17  ;;  %s464_s20 = scalar_lea.sflag [#allocation4], %s992_s26 }
  0x36   : > { %375 = vmatpush.msra.mxu0 %v353_v1  ;;  %v395_v8 = vld [vmem:[#allocation7 + $0x60] sm:$0xff]  ;;  %v394_v9 = vld [vmem:[#allocation7 + $0x58] sm:$0xff]  ;;  %v393_v10 = vld [vmem:[#allocation7 + $0x50] sm:$0xff]  ;;  %v316_v21 = vsel %vm315_vm0, %v313_v7, 0.0  ;;  %v314_v22 = vmul.f32 %v313_v7, %v313_v7  ;;  %s482_s10 = sshll.u32 %s478_s8, 4  ;;  %s802_s25 = scalar_lea.hbm %s1059_s5, 32  ;;  %s483_s10 = int_to_ptr.hbm [resolvable:$true] %s482_s10 }
  0x37   : > { %404 = vmatpush.msra.mxu1 %v397_v4  ;;  %v392_v11 = vld [vmem:[#allocation7 + $0x48] sm:$0xff]  ;;  %v391_v12 = vld [vmem:[#allocation7 + $0x40] sm:$0xff]  ;;  %v390_v13 = vld [vmem:[#allocation7 + $0x38] sm:$0xff]  ;;  %317 = vadd.xlane.f32.xlu0 %v316_v21  ;;  %s796_s12 = sshra.s32 %s483_s10, 4  ;;  %s797_s12 = int_to_ptr.hbm [resolvable:$true] %s796_s12 }
  0x38   : > { %376 = vmatpush.msra.mxu0 %v352_v3  ;;  %v389_v14 = vld [vmem:[#allocation7 + $0x30] sm:$0xff]  ;;  %v388_v15 = vld [vmem:[#allocation7 + $0x28] sm:$0xff]  ;;  %v387_v16 = vld [vmem:[#allocation7 + $0x20] sm:$0xff]  ;;  %v319_v23 = vsel %vm315_vm0, %v314_v22, 0.0  ;;  %s798_s1 = scalar_lea.hbm %s797_s12, 8  ;;  %p803_p5 = scmp.lt.s32.totalorder %s797_s12, %s1059_s5 }
  0x39   : > { %405 = vmatpush.msra.mxu1 %v396_v5  ;;  %v386_v17 = vld [vmem:[#allocation7 + $0x18] sm:$0xff]  ;;  %v385_v18 = vld [vmem:[#allocation7 + $0x10] sm:$0xff]  ;;  %v384_v19 = vld [vmem:[#allocation7 + $0x8] sm:$0xff]  ;;  %320 = vadd.xlane.f32.xlu1 %v319_v23  ;;  %p799_p1 = scmp.ne.s32.totalorder %s797_s12, %s798_s1  ;;  %p804_p6 = scmp.lt.s32.totalorder %s802_s25, %s798_s1 }
  0x3a   : > { %377 = vmatpush.msra.mxu0 %v351_v6  ;;  %v383_v20 = vld [vmem:[#allocation7] sm:$0xff]  ;;  %v686_v24 = vld [vmem:[%s1056_s2] ss:$0 sm:$0xff] }
  0x3b   : > { %612 = vmatmul.msk.f32.vlgmr.msra.gmra.mxu0 %vm315_vm0, %v313_v7  ;;  %406 = vmatpush.msra.mxu1 %v395_v8  ;;  %v687_v28 = vld [vmem:[%s1058_s4] ss:$0 sm:$0xff]  ;;  %p800_p3 = pnand %p799_p1, %p961_p2  ;;  %p805_p7 = por %p804_p6, %p803_p5 }
  0x3d   : > { %407 = vmatpush.msra.mxu1 %v394_v9  ;;  %p801_p11 = pneg %p800_p3 }
  0x3f   : > { %408 = vmatpush.msra.mxu1 %v393_v10  ;;  %p806_p8 = pnand %p805_p7, %p801_p11 }
  0x41   : > { %409 = vmatpush.msra.mxu1 %v392_v11 }
  0x43   : > { %410 = vmatpush.msra.mxu1 %v391_v12 }
  0x45   : > { %411 = vmatpush.msra.mxu1 %v390_v13 }
  0x47   : > { %412 = vmatpush.msra.mxu1 %v389_v14 }
  0x49   : > { %413 = vmatpush.msra.mxu1 %v388_v15 }
  0x4b   : > { %414 = vmatpush.msra.mxu1 %v387_v16 }
  0x4d   : > { %415 = vmatpush.msra.mxu1 %v386_v17 }
  0x4f   : > { %416 = vmatpush.msra.mxu1 %v385_v18 }
  0x51   : > { %417 = vmatpush.msra.mxu1 %v384_v19 }
  0x53   : > { %418 = vmatpush.msra.mxu1 %v383_v20 }
  0xb8   : > { %v379_v25 = vpop.f32.mrf.mxu0 }
  0xb9   : > { %v380_v26 = vadd.f32 %v686_v24, %v379_v25 }
  0xbb   : > { %v382_v27 = vmax.f32 %v380_v26, 0.0 }
  0xbd   : > { %419 = vmatmul.f32.vlgmr.msra.gmra.mxu1 %v382_v27 }
 0x13a   : > { %v420_v29 = vpop.f32.mrf.mxu1 }
 0x13b   : > { %v421_v30 = vadd.f32 %v687_v28, %v420_v29 }
 0x13d   : > { %423 = vst [vmem:[%s302_s15] sm:$0xff] %v421_v30  ;;  %425 = vadd.xlane.f32.xlu0 %v421_v30  ;;  %v424_v31 = vmul.f32 %v421_v30, %v421_v30 }
 0x13f   : > { %427 = vadd.xlane.f32.xlu1 %v424_v31 }
 0x140   : > { %809 = shalt.err (!%p806_p8)
}
 0x141   : > { %627 = dma.vmem_to_hbm [thread:$0]  (%p961_p2), %s481_s9, 128, %s483_s10, %s464_s20   ;;  %v318_v32 = vpop.xlane.xlu0 %317  ;;  %v321_v35 = vpop.xlane.xlu1 %320  ;;  %v458_v15 = vlaneseq }
 0x142   : > { %v322_v33 = vrot.slane %v318_v32, 4  ;;  %v328_v37 = vrot.slane %v321_v35, 4  ;;  %p309_p2 = scmp.lt.s32.totalorder %s917_s28, 3 }
 0x143   : > { %v459_v19 = vand.u32 127, %v458_v15 }
 0x144   : > { %v323_v34 = vadd.f32 %v322_v33, %v318_v32  ;;  %v329_v39 = vadd.f32 %v328_v37, %v321_v35  ;;  %s1074_s28 = smov (!%p309_p2, %s917_s28), 3 }
 0x145   : > { %s611_s27 = sshll.u32 %s1074_s28, 3  ;;  %vm460_vm3 = vcmp.lt.s32.totalorder %v459_v19, 64 }
 0x146   : > { %v324_v36 = vrot.slane %v323_v34, 2  ;;  %v330_v41 = vrot.slane %v329_v39, 2  ;;  %s312_s17 = scalar_lea.vmem %s1060_s6, %s611_s27 }
 0x148   : > { %v325_v38 = vadd.f32 %v324_v36, %v323_v34  ;;  %v331_v43 = vadd.f32 %v330_v41, %v329_v39 }
 0x14a   : > { %v326_v40 = vrot.slane %v325_v38, 1  ;;  %v332_v45 = vrot.slane %v331_v43, 1 }
 0x14c   : > { %v327_v42 = vadd.f32 %v326_v40, %v325_v38  ;;  %v333_v47 = vadd.f32 %v332_v45, %v331_v43 }
 0x14e   : > { %v334_v44 = vmul.f32 %v327_v42, %v327_v42 }
 0x150   : > { %v335_v46 = vmul.f32 0.00390625, %v334_v44 }
 0x152   : > { %v336_v48 = vsub.f32 %v333_v47, %v335_v46 }
 0x154   : > { %v337_v49 = vmul.f32 0.003921569, %v336_v48 }
 0x156   : > { %v338_v53 = vmax.f32 %v337_v49, 0.0 }
 0x158   : > { %688 = vrsqrt.f32 %v338_v53  ;;  %vm346_vm1 = vcmp.eq.f32.partialorder %v338_v53, inf  ;;  %v349_v21 = vand.u32 2147483648, %v338_v53  ;;  %vm348_vm2 = vcmp.eq.f32.partialorder %v338_v53, 0.0 }
 0x15e   : > { %v689_v0 = vpop.eup %688 }
 0x15f   : > { %v340_v4 = vmul.f32 %v689_v0, %v338_v53 }
 0x161   : > { %v341_v7 = vmul.f32 %v689_v0, %v340_v4 }
 0x163   : > { %v342_v9 = vmul.f32 0.5, %v341_v7 }
 0x165   : > { %v343_v10 = vsub.f32 1.5, %v342_v9 }
 0x167   : > { %v344_v13 = vmul.f32 %v689_v0, %v343_v10 }
 0x169   : > { %v345_v17 = vmul.f32 %v344_v13, %v338_v53 }
 0x16b   : > { %v347_v22 = vsel %vm346_vm1, %v338_v53, %v345_v17 }
 0x16c   : > { %v350_v26 = vsel %vm348_vm2, %v349_v21, %v347_v22 }
 0x1b0   : > { %v426_v50 = vpop.xlane.xlu0 %425 }
 0x1b1   : > { %v429_v51 = vrot.slane %v426_v50, 4 }
 0x1b2   : > { %v428_v52 = vpop.xlane.xlu1 %427 }
 0x1b3   : > { %v430_v54 = vadd.f32 %v429_v51, %v426_v50  ;;  %v435_v55 = vrot.slane %v428_v52, 4 }
 0x1b5   : > { %v431_v56 = vrot.slane %v430_v54, 2  ;;  %v436_v57 = vadd.f32 %v435_v55, %v428_v52 }
 0x1b7   : > { %v432_v58 = vadd.f32 %v431_v56, %v430_v54  ;;  %v437_v59 = vrot.slane %v436_v57, 2 }
 0x1b9   : > { %v433_v60 = vrot.slane %v432_v58, 1  ;;  %v438_v61 = vadd.f32 %v437_v59, %v436_v57 }
 0x1bb   : > { %v434_v62 = vadd.f32 %v433_v60, %v432_v58  ;;  %v439_v63 = vrot.slane %v438_v61, 1 }
 0x1bd   : > { %v441_v1 = vmul.f32 %v434_v62, %v434_v62  ;;  %v440_v3 = vadd.f32 %v439_v63, %v438_v61 }
 0x1bf   : > { %v442_v2 = vmul.f32 0.00390625, %v441_v1 }
 0x1c1   : > { %v443_v5 = vsub.f32 %v440_v3, %v442_v2 }
 0x1c3   : > { %v444_v6 = vmul.f32 0.003921569, %v443_v5 }
 0x1c5   : > { %v445_v8 = vmax.f32 %v444_v6, 0.0 }
 0x1c7   : > { %690 = vrsqrt.f32 %v445_v8  ;;  %vm453_vm4 = vcmp.eq.f32.partialorder %v445_v8, inf  ;;  %v456_v24 = vand.u32 2147483648, %v445_v8  ;;  %vm455_vm5 = vcmp.eq.f32.partialorder %v445_v8, 0.0 }
 0x1cd   : > { %v691_v11 = vpop.eup %690 }
 0x1ce   : > { %v447_v12 = vmul.f32 %v691_v11, %v445_v8 }
 0x1d0   : > { %v448_v14 = vmul.f32 %v691_v11, %v447_v12 }
 0x1d2   : > { %v449_v16 = vmul.f32 0.5, %v448_v14 }
 0x1d4   : > { %v450_v18 = vsub.f32 1.5, %v449_v16 }
 0x1d6   : > { %v451_v20 = vmul.f32 %v691_v11, %v450_v18 }
 0x1d8   : > { %v452_v23 = vmul.f32 %v451_v20, %v445_v8 }
 0x1da   : > { %v454_v25 = vsel %vm453_vm4, %v445_v8, %v452_v23 }
 0x1db   : > { %v457_v27 = vsel %vm455_vm5, %v456_v24, %v454_v25 }
 0x1dc   : > { %v461_v28 = vsel %vm460_vm3, %v350_v26, %v457_v27 }
 0x1dd   : > { %462 = vst [vmem:[%s312_s17] sm:$0xff] %v461_v28 }
 0x1de PF: > { %p649_p9 = scmp.ge.s32.totalorder %s852_s24, 2  ;;  %s497_s28 = sand.u32 1, %s840_s21  }
 0x1df   : > { %s498_s18 = scalar_lea.sflag [#allocation4], %s497_s28 }
 0x1e0   : > { %p641_p10 = pnand %p649_p9, %p965_p4 }
 0x1e2   : > { %p642_p12 = pneg %p641_p10 }
 0x1e4   : > { %835 = dma.done.wait (%p642_p12), %s498_s18, 128  }
 0x1e5   : > { %837 = vsyncadd (%p642_p12), %s498_s18, 4294967168  ;;  %p21_p13 = scmp.ge.s32.totalorder %s935_s16, 6   ;;  %s1069_s21 = smov %s844_s22 }
 0x1e6   : > { %s1070_s22 = smov %s848_s23  ;;  %s1071_s23 = smov %s946_s19 }
 0x1e7   : > { %s1072_s24 = smov %s935_s16  ;;  %23 = sbr.rel (!%p21_p13) target bundleno = 8 (0x8), region = 105 }
 0x1ec   :  { %511 = vsyncpa [#allocation3], 1 }
 0x1ed   :  { %513 = vsyncpa [#allocation3 + $0x1], 1 }
 0x1ee   :  { %514 = vsyncpa [#allocation6], 1 }
 0x1ef   :  { %515 = vsyncpa [#allocation4], 1 }
 0x1f0   :  { %517 = vsyncpa [#allocation4 + $0x1], 1 }

</bundles_post_ra>
